<compile_context>
chip_gen: v7x
topology: tpu7x:2x2x1
jax: 0.10.0
libtpu: 0.0.40
codegen_flags: <defaults>
</compile_context>

<pallas_src>
import functools

import jax
import jax.numpy as jnp
from jax.experimental import pallas as pl
from jax.experimental.pallas import tpu as pltpu


def _focal_body(x, t, tile_idx, *, gamma, ignore_index, hw, t_hw):
    """x: (N, C, T) logits block, t: (N, T) int32 targets block -> (N, T) focal loss."""
    x = x.astype(jnp.float32)

    # log-softmax cross entropy, reduced over the class (sublane) axis.
    m = jnp.max(x, axis=1, keepdims=True)                      # (N, 1, T)
    lse = m[:, 0, :] + jnp.log(jnp.sum(jnp.exp(x - m), axis=1))  # (N, T)
    cls = jax.lax.broadcasted_iota(jnp.int32, x.shape, 1)        # (N, C, T)
    picked = jnp.sum(jnp.where(cls == t[:, None, :], x, 0.0), axis=1)  # (N, T)

    # Mask ignored targets and out-of-range spatial positions (ragged tail).
    pos = tile_idx * t_hw + jax.lax.broadcasted_iota(jnp.int32, t.shape, 1)
    valid = (t != ignore_index) & (pos < hw)
    ce = jnp.where(valid, lse - picked, 0.0)                    # ignored -> 0 (torch)

    # focal modulation: (1 - exp(-ce))**gamma * ce
    p = jnp.maximum(1.0 - jnp.exp(-ce), 0.0)
    g = float(gamma)
    if g == int(g) and 0 <= int(g) <= 4:
        mod = jnp.ones_like(p)
        for _ in range(int(g)):
            mod = mod * p                                       # VPU multiplies, no pow
    else:
        mod = jnp.power(p, g)
    return mod * ce


def _focal_sum_kernel(logits_ref, tgt_ref, psum_ref, *, gamma, ignore_index, hw, t_hw):
    j = pl.program_id(0)
    focal = _focal_body(logits_ref[...], tgt_ref[...], j,
                        gamma=gamma, ignore_index=ignore_index, hw=hw, t_hw=t_hw)
    # One aligned (8,128) partial-sum tile per grid step (grid stays "parallel").
    psum_ref[...] = jnp.broadcast_to(jnp.sum(focal), psum_ref.shape)


def _focal_elem_kernel(logits_ref, tgt_ref, out_ref, *, gamma, ignore_index, hw, t_hw):
    j = pl.program_id(0)
    out_ref[...] = _focal_body(logits_ref[...], tgt_ref[...], j,
                               gamma=gamma, ignore_index=ignore_index, hw=hw, t_hw=t_hw)


def focal_loss(inputs, targets, reduction="mean", ignore_index=-100, gamma=2.0,
               vmem_budget_bytes=4 * 1024 * 1024):
    """inputs: (N, C, H, W) float logits; targets: (N, H, W) int class ids."""
    N, C, H, W = inputs.shape
    HW = H * W
    M = N * HW

    # Zero-copy reshapes; keep logits in their input dtype (upcast in-kernel).
    logits = inputs.reshape(N, C, HW)
    tgts = targets.reshape(N, HW).astype(jnp.int32)

    # Spatial (lane) tile width: largest multiple of 128 that fits the
    # double-buffered VMEM budget, never exceeding HW.
    itemsize = jnp.dtype(inputs.dtype).itemsize
    bytes_per_lane_block = N * 128 * (C * itemsize + 4 + 4)  # logits + targets + out
    if HW <= 128:
        t_hw = HW
    else:
        max_lane_blocks = max(1, vmem_budget_bytes // (2 * bytes_per_lane_block))
        t_hw = 128 * min(HW // 128, max_lane_blocks)
    n_tiles = pl.cdiv(HW, t_hw)

    in_specs = [
        pl.BlockSpec((N, C, t_hw), lambda j: (0, 0, j)),
        pl.BlockSpec((N, t_hw), lambda j: (0, j)),
    ]
    cparams = pltpu.CompilerParams(
        dimension_semantics=("parallel",),
        vmem_limit_bytes=32 * 1024 * 1024,
    )

    if reduction in ("mean", "sum"):
        kernel = functools.partial(_focal_sum_kernel, gamma=gamma,
                                   ignore_index=ignore_index, hw=HW, t_hw=t_hw)
        psum = pl.pallas_call(
            kernel,
            out_shape=jax.ShapeDtypeStruct((n_tiles, 8, 128), jnp.float32),
            grid_spec=pltpu.PrefetchScalarGridSpec(
                num_scalar_prefetch=0,
                grid=(n_tiles,),
                in_specs=in_specs,
                out_specs=pl.BlockSpec((1, 8, 128), lambda j: (j, 0, 0)),
            ),
            compiler_params=cparams,
        )(logits, tgts)
        total = jnp.sum(psum[:, 0, 0])
        if reduction == "mean":
            # torch: reduction='none' then .mean() -> divide by total element count M
            return total / M
        return total
    elif reduction == "none":
        kernel = functools.partial(_focal_elem_kernel, gamma=gamma,
                                   ignore_index=ignore_index, hw=HW, t_hw=t_hw)
        HW_out = n_tiles * t_hw  # output padded so blocks divide evenly; sliced below
        elem = pl.pallas_call(
            kernel,
            out_shape=jax.ShapeDtypeStruct((N, HW_out), jnp.float32),
            grid_spec=pltpu.PrefetchScalarGridSpec(
                num_scalar_prefetch=0,
                grid=(n_tiles,),
                in_specs=in_specs,
                out_specs=pl.BlockSpec((N, t_hw), lambda j: (0, j)),
            ),
            compiler_params=cparams,
        )(logits, tgts)
        return elem[:, :HW].reshape(N, H, W)
    else:
        raise NotImplementedError()


def _focal_loss_ref(inputs, targets, reduction="mean", ignore_index=-100, gamma=2.0):
    N, C, H, W = inputs.shape
    logits = jnp.transpose(inputs, (0, 2, 3, 1)).reshape(-1, C).astype(jnp.float32)
    t = targets.reshape(-1)
    lse = jax.scipy.special.logsumexp(logits, axis=-1)
    picked = jnp.take_along_axis(
        logits, jnp.clip(t, 0, C - 1)[:, None], axis=-1)[:, 0]
    ce = jnp.where(t != ignore_index, lse - picked, 0.0)
    fl = (1.0 - jnp.exp(-ce)) ** gamma * ce
    if reduction == "mean":
        return fl.mean()
    if reduction == "sum":
        return fl.sum()
    return fl.reshape(N, H, W)


if __name__ == "__main__":
    key = jax.random.PRNGKey(0)
    k1, k2, k3 = jax.random.split(key, 3)

    # Main test: matches the PyTorch module's typical small shape.
    N, C, H, W = 2, 4, 16, 16
    inputs = jax.random.normal(k1, (N, C, H, W), dtype=jnp.float32)
    targets = jax.random.randint(k2, (N, H, W), 0, C, dtype=jnp.int32)
    ignore_mask = jax.random.uniform(k3, (N, H, W)) < 0.1
    targets = jnp.where(ignore_mask, -100, targets)

    for reduction in ("mean", "sum", "none"):
        out = jax.block_until_ready(focal_loss(inputs, targets, reduction=reduction))
        ref = _focal_loss_ref(inputs, targets, reduction=reduction)
        assert jnp.allclose(out, ref, atol=1e-5, rtol=1e-5), (reduction, out, ref)

    # Ragged test: HW not a multiple of 128 exercises the in-kernel tail masking.
    N2, C2, H2, W2 = 2, 5, 10, 15
    inputs2 = jax.random.normal(k1, (N2, C2, H2, W2), dtype=jnp.float32)
    targets2 = jax.random.randint(k2, (N2, H2, W2), 0, C2, dtype=jnp.int32)
    for reduction in ("mean", "none"):
        out2 = jax.block_until_ready(focal_loss(inputs2, targets2, reduction=reduction))
        ref2 = _focal_loss_ref(inputs2, targets2, reduction=reduction)
        assert jnp.allclose(out2, ref2, atol=1e-5, rtol=1e-5), (reduction, out2, ref2)

    print("KERNEL_OK")
</pallas_src>

<mosaic_0001>
module attributes {stable_mosaic.version = 11 : i64} {
  func.func @_focal_sum_kernel(%arg0: i32, %arg1: memref<2x4x256xf32, #tpu.memory_space<vmem>>, %arg2: memref<2x256xi32, #tpu.memory_space<vmem>>, %arg3: memref<1x8x128xf32, #tpu.memory_space<vmem>>) attributes {dimension_semantics = [#tpu.dimension_semantics<parallel>], iteration_bounds = array<i64: 1>, scalar_prefetch = 0 : i64, scratch_operands = 0 : i64, tpu.core_type = #tpu.core_type<tc>, window_params = [{transform_indices = @transform_0, window_bounds = array<i64: 2, 4, 256>}, {transform_indices = @transform_1, window_bounds = array<i64: 2, 256>}, {transform_indices = @transform_2, window_bounds = array<i64: 1, 8, 128>}]} {
    %c0 = arith.constant 0 : index
    %c0_0 = arith.constant 0 : index
    %c0_1 = arith.constant 0 : index
    %0 = vector.load %arg1[%c0, %c0_0, %c0_1] : memref<2x4x256xf32, #tpu.memory_space<vmem>>, vector<2x4x256xf32>
    %c0_2 = arith.constant 0 : index
    %c0_3 = arith.constant 0 : index
    %1 = vector.load %arg2[%c0_2, %c0_3] : memref<2x256xi32, #tpu.memory_space<vmem>>, vector<2x256xi32>
    %cst = arith.constant dense<0xFF800000> : vector<2x256xf32>
    %2 = vector.multi_reduction <maximumf>, %0, %cst [1] : vector<2x4x256xf32> to vector<2x256xf32>
    %3 = vector.shape_cast %2 : vector<2x256xf32> to vector<2x1x256xf32>
    %4 = vector.shape_cast %3 : vector<2x1x256xf32> to vector<2x256xf32>
    %5 = vector.broadcast %3 : vector<2x1x256xf32> to vector<2x4x256xf32>
    %6 = arith.subf %0, %5 : vector<2x4x256xf32>
    %7 = math.exp %6 : vector<2x4x256xf32>
    %cst_4 = arith.constant dense<0.000000e+00> : vector<2x256xf32>
    %8 = vector.multi_reduction <add>, %7, %cst_4 [1] : vector<2x4x256xf32> to vector<2x256xf32>
    %9 = math.log %8 : vector<2x256xf32>
    %10 = arith.addf %4, %9 : vector<2x256xf32>
    %11 = tpu.iota {dimensions = array<i32: 1>} : vector<2x4x256xi32>
    %12 = vector.shape_cast %1 : vector<2x256xi32> to vector<2x1x256xi32>
    %13 = vector.broadcast %12 : vector<2x1x256xi32> to vector<2x4x256xi32>
    %14 = arith.cmpi eq, %11, %13 : vector<2x4x256xi32>
    %cst_5 = arith.constant 0.000000e+00 : f32
    %15 = vector.broadcast %cst_5 : f32 to vector<2x4x256xf32>
    %16 = arith.select %14, %0, %15 : vector<2x4x256xi1>, vector<2x4x256xf32>
    %cst_6 = arith.constant dense<0.000000e+00> : vector<2x256xf32>
    %17 = vector.multi_reduction <add>, %16, %cst_6 [1] : vector<2x4x256xf32> to vector<2x256xf32>
    %c256_i32 = arith.constant 256 : i32
    %18 = arith.muli %arg0, %c256_i32 : i32
    %19 = tpu.iota {dimensions = array<i32: 1>} : vector<2x256xi32>
    %20 = vector.broadcast %18 : i32 to vector<2x256xi32>
    %21 = arith.addi %20, %19 : vector<2x256xi32>
    %c-100_i32 = arith.constant -100 : i32
    %22 = vector.broadcast %c-100_i32 : i32 to vector<2x256xi32>
    %23 = arith.cmpi ne, %1, %22 : vector<2x256xi32>
    %c256_i32_7 = arith.constant 256 : i32
    %24 = vector.broadcast %c256_i32_7 : i32 to vector<2x256xi32>
    %25 = arith.cmpi slt, %21, %24 : vector<2x256xi32>
    %26 = arith.andi %23, %25 : vector<2x256xi1>
    %27 = arith.subf %10, %17 : vector<2x256xf32>
    %cst_8 = arith.constant 0.000000e+00 : f32
    %28 = vector.broadcast %cst_8 : f32 to vector<2x256xf32>
    %29 = arith.select %26, %27, %28 : vector<2x256xi1>, vector<2x256xf32>
    %cst_9 = arith.constant 0.000000e+00 : f32
    %30 = vector.broadcast %cst_9 : f32 to vector<2x256xf32>
    %31 = arith.subf %30, %29 : vector<2x256xf32>
    %32 = math.exp %31 : vector<2x256xf32>
    %cst_10 = arith.constant 1.000000e+00 : f32
    %33 = vector.broadcast %cst_10 : f32 to vector<2x256xf32>
    %34 = arith.subf %33, %32 : vector<2x256xf32>
    %cst_11 = arith.constant 0.000000e+00 : f32
    %35 = vector.broadcast %cst_11 : f32 to vector<2x256xf32>
    %36 = arith.maximumf %34, %35 : vector<2x256xf32>
    %cst_12 = arith.constant 1.000000e+00 : f32
    %37 = vector.broadcast %cst_12 : f32 to vector<2x256xf32>
    %38 = arith.mulf %37, %36 : vector<2x256xf32>
    %39 = arith.mulf %38, %36 : vector<2x256xf32>
    %40 = arith.mulf %39, %29 : vector<2x256xf32>
    %41 = vector.shape_cast %40 : vector<2x256xf32> to vector<1x2x256xf32>
    %cst_13 = arith.constant dense<0.000000e+00> : vector<1xf32>
    %42 = vector.multi_reduction <add>, %41, %cst_13 [1, 2] : vector<1x2x256xf32> to vector<1xf32>
    %43 = vector.shape_cast %42 : vector<1xf32> to vector<1x1x1xf32>
    %44 = vector.extract %43[0, 0, 0] : f32 from vector<1x1x1xf32>
    %45 = vector.broadcast %44 : f32 to vector<1x8x128xf32>
    %c0_14 = arith.constant 0 : index
    %c0_15 = arith.constant 0 : index
    %c0_16 = arith.constant 0 : index
    %46 = vector.load %arg3[%c0_14, %c0_15, %c0_16] : memref<1x8x128xf32, #tpu.memory_space<vmem>>, vector<1x8x128xf32>
    tpu.vector_store %arg3[%c0_14, %c0_15, %c0_16], %45 {strides = array<i32>} : memref<1x8x128xf32, #tpu.memory_space<vmem>>, vector<1x8x128xf32>,
    return
  }
  func.func @transform_0(%arg0: i32) -> (i32, i32, i32) {
    %c0_i32 = arith.constant 0 : i32
    %c0_i32_0 = arith.constant 0 : i32
    %c0_i32_1 = arith.constant 0 : i32
    return %c0_i32, %c0_i32_0, %arg0 : i32, i32, i32
  }
  func.func @transform_1(%arg0: i32) -> (i32, i32) {
    %c0_i32 = arith.constant 0 : i32
    %c0_i32_0 = arith.constant 0 : i32
    return %c0_i32, %arg0 : i32, i32
  }
  func.func @transform_2(%arg0: i32) -> (i32, i32, i32) {
    %c0_i32 = arith.constant 0 : i32
    %c0_i32_0 = arith.constant 0 : i32
    %c0_i32_1 = arith.constant 0 : i32
    return %arg0, %c0_i32, %c0_i32_0 : i32, i32, i32
  }
}

</mosaic_0001>

<bundles_post_ra>
// kernel: tpu_custom_call.1
= control target key start
LH: loop header
LB: loop body
LE: loop exit
PB: predicated region body
PF: predicated region fallthrough
CT: control target
= control target key end

     0   :  { %7 = vsyncpa [#allocation3], 0  ;;  %s515_s0 = inlined_call_operand.hbm [shape: f32[2,4,256], index: 0, kind: input, shape index: {}]   ;;  %s516_s1 = inlined_call_operand.hbm [shape: s32[2,256], index: 1, kind: input, shape index: {}]   ;;  %s517_s2 = inlined_call_operand.hbm [shape: f32[1,8,128], index: 2, kind: output, shape index: {}]  }
   0x1   :  { %8 = vsyncpa [#allocation6], 0 }
   0x2   :  { %9 = vsyncpa [#allocation4], 0  ;;  %s406_s9 = smov [#allocation2]   ;;  %s334_s13 = scalar_lea.hbm %s515_s0, 256 }
   0x3   :  { %s15_s10 = sshll.u32 %s406_s9, 4  ;;  %p335_p0 = scmp.ne.s32.totalorder %s515_s0, %s334_s13  ;;  %s16_s10 = int_to_ptr.vmem [resolvable:$true] %s15_s10 }
   0x4   :  { %p338_p1 = scmp.lt.u32.totalorder %s334_s13, %s515_s0 }
   0x6   :  { %p340_p2 = pnand %p338_p1, %p335_p0 }
   0x8   :  { %343 = shalt.err (!%p340_p2)
}
   0x9   :  { %s344_s18 = scalar_lea.vmem %s16_s10, 256  ;;  %p349_p4 = scmp.lt.s32.totalorder %s16_s10, %s16_s10 }
   0xa   :  { %p345_p3 = scmp.ne.s32.totalorder %s16_s10, %s344_s18  ;;  %p350_p5 = scmp.lt.s32.totalorder %s344_s18, %s344_s18 }
   0xc   :  { %p351_p6 = por %p350_p5, %p349_p4 }
   0xe   :  { %p352_p7 = pnand %p351_p6, %p345_p3 }
  0x10   :  { %355 = shalt.err (!%p352_p7)
}
  0x11   :  { %s407_s19 = smov 128   ;;  %s408_s20 = smov 8  }
  0x12   :  { %21 = dma.hbm_to_vmem [thread:$0]  %s515_s0, 256, %s16_s10, [#allocation3], %s407_s19, %s407_s19, %s408_s20  }
  0x13   :  { %s409_s23 = smov [#allocation5]   ;;  %s356_s27 = scalar_lea.hbm %s516_s1, 64 }
  0x14   :  { %s28_s24 = sshll.u32 %s409_s23, 4  ;;  %p357_p8 = scmp.ne.s32.totalorder %s516_s1, %s356_s27  ;;  %s29_s24 = int_to_ptr.vmem [resolvable:$true] %s28_s24 }
  0x15   :  { %p360_p9 = scmp.lt.u32.totalorder %s356_s27, %s516_s1 }
  0x17   :  { %p362_p10 = pnand %p360_p9, %p357_p8 }
  0x19   :  { %365 = shalt.err (!%p362_p10)
}
  0x1a   :  { %s366_s4 = scalar_lea.vmem %s29_s24, 64  ;;  %p371_p12 = scmp.lt.s32.totalorder %s29_s24, %s29_s24 }
  0x1b   :  { %p367_p11 = scmp.ne.s32.totalorder %s29_s24, %s366_s4  ;;  %p372_p13 = scmp.lt.s32.totalorder %s366_s4, %s366_s4 }
  0x1d   :  { %p373_p0 = por %p372_p13, %p371_p12 }
  0x1f   :  { %p374_p1 = pnand %p373_p0, %p367_p11 }
  0x21   :  { %377 = shalt.err (!%p374_p1)
}
  0x22   :  { %31 = dma.hbm_to_vmem [thread:$0]  %s516_s1, 64, %s29_s24, [#allocation6]  }
  0x23   :  { %400 = dma.done.wait [#allocation3], 256  }
  0x24   :  { %401 = vsyncadd [#allocation3], 4294967040 }
  0x25   :  { %402 = dma.done.wait [#allocation6], 64  }
  0x26   :  { %403 = vsyncadd [#allocation6], 4294967232  ;;  %vm47_vm0 = vcmask 1043456   ;;  %v38_v0 = vld [vmem:[#allocation2] sm:$0xff]  ;;  %v39_v1 = vld [vmem:[#allocation2 + $0x8] sm:$0xff]  ;;  %v136_v14 = vlaneseq  ;;  %vm249_vm5 = vcmask 1041409  }
  0x27   :  { %v453_v2 = vcombine.high %v38_v0, %v38_v0  ;;  %v455_v3 = vcombine.high %v39_v1, %v39_v1  ;;  %v48_v4 = vsel %vm47_vm0, %v38_v0, -inf  ;;  %v62_v5 = vsel %vm47_vm0, %v39_v1, -inf  ;;  %v470_v36 = vld [vmem:[#allocation5] sm:$0xf]  ;;  %s413_s1 = smov [#allocation7]  }
  0x28   :  { %v49_v6 = vrot.slane %v48_v4, 4  ;;  %v63_v7 = vrot.slane %v62_v5, 4  ;;  %v410_v15 = vmov 1966171168   ;;  %v463_v25 = vshrl.u32 %v136_v14, 7  ;;  %s298_s6 = sshll.u32 %s413_s1, 4  ;;  %s299_s6 = int_to_ptr.vmem [resolvable:$true] %s298_s6 }
  0x29   :  { %v55_v8 = vsel %vm47_vm0, %v453_v2, -inf  ;;  %v69_v9 = vsel %vm47_vm0, %v455_v3, -inf  ;;  %v139_v16 = vunpack.c.l.s4 %v410_v15  ;;  %vm205_vm6 = vcmp.ne.s32.totalorder %v470_v36, 4294967196  ;;  %s378_s8 = scalar_lea.vmem %s299_s6, 128  ;;  %p383_p3 = scmp.lt.s32.totalorder %s299_s6, %s299_s6 }
  0x2a   :  { %v50_v10 = vmax.f32 %v48_v4, %v49_v6  ;;  %v56_v11 = vrot.slane %v55_v8, 4  ;;  %v64_v12 = vmax.f32 %v62_v5, %v63_v7  ;;  %v70_v13 = vrot.slane %v69_v9, 4  ;;  %p379_p2 = scmp.ne.s32.totalorder %s299_s6, %s378_s8  ;;  %p384_p4 = scmp.lt.s32.totalorder %s378_s8, %s378_s8 }
  0x2b   :  { %v140_v26 = vunpack.c.0.s8 %v139_v16  ;;  %v148_v47 = vsub.s32 0, %v463_v25  ;;  %v152_v48 = vsub.s32 1, %v463_v25  ;;  %vm251_vm8 = vcmask 1043459  }
  0x2c   :  { %v51_v17 = vrot.slane %v50_v10, 2  ;;  %v57_v18 = vmax.f32 %v55_v8, %v56_v11  ;;  %v65_v19 = vrot.slane %v64_v12, 2  ;;  %v71_v20 = vmax.f32 %v69_v9, %v70_v13  ;;  %p385_p5 = por %p384_p4, %p383_p3 }
  0x2d   :  { %v143_v35 = vsub.s32 %v140_v26, %v463_v25  ;;  %vm253_vm9 = vcmask 1045509   ;;  %vm255_vm10 = vcmask 1047559   ;;  %vm277_vm12 = vcmask 1041408  }
  0x2e   :  { %v52_v21 = vmax.f32 %v50_v10, %v51_v17  ;;  %v58_v22 = vrot.slane %v57_v18, 2  ;;  %v66_v23 = vmax.f32 %v64_v12, %v65_v19  ;;  %v72_v24 = vrot.slane %v71_v20, 2  ;;  %p386_p6 = pnand %p385_p5, %p379_p2 }
  0x2f   :  { %v144_v41 = vrot.slane %v470_v36, %v143_v35 }
  0x30   :  { %v53_v27 = vrot.slane %v52_v21, 1  ;;  %v59_v28 = vmax.f32 %v57_v18, %v58_v22  ;;  %v67_v29 = vrot.slane %v66_v23, 1  ;;  %v73_v30 = vmax.f32 %v71_v20, %v72_v24 }
  0x31   :  { %v145_v46 = vcombine.high %v144_v41, %v144_v41  ;;  %v149_v49 = vrot.slane %v144_v41, %v148_v47  ;;  %v153_v51 = vrot.slane %v144_v41, %v152_v48 }
  0x32   :  { %v465_v31 = vmax.f32 %v52_v21, %v53_v27  ;;  %v60_v32 = vrot.slane %v59_v28, 1  ;;  %v467_v33 = vmax.f32 %v66_v23, %v67_v29  ;;  %v74_v34 = vrot.slane %v73_v30, 1 }
  0x33   :  { %v157_v50 = vrot.slane %v145_v46, %v148_v47  ;;  %v161_v52 = vrot.slane %v145_v46, %v152_v48  ;;  %vm162_vm1 = vcmp.eq.s32.totalorder %v463_v25, %v149_v49  ;;  %vm163_vm3 = vcmp.eq.s32.totalorder %v463_v25, %v153_v51 }
  0x34   :  { %v472_v37 = vmax.f32 %v59_v28, %v60_v32  ;;  %v474_v38 = vmax.f32 %v73_v30, %v74_v34  ;;  %v166_v53 = vsel %vm162_vm1, %v38_v0, 0.0  ;;  %v167_v59 = vsel %vm163_vm3, %v453_v2, 0.0 }
  0x35   :  { %vm164_vm2 = vcmp.eq.s32.totalorder %v463_v25, %v157_v50  ;;  %vm165_vm4 = vcmp.eq.s32.totalorder %v463_v25, %v161_v52  ;;  %v170_v4 = vsel %vm47_vm0, %v166_v53, 0.0  ;;  %v177_v9 = vsel %vm47_vm0, %v167_v59, 0.0 }
  0x36   :  { %v80_v39 = vcombine.low %v465_v31, %v472_v37  ;;  %v81_v40 = vcombine.low %v467_v33, %v474_v38  ;;  %v168_v55 = vsel %vm164_vm2, %v39_v1, 0.0  ;;  %v169_v60 = vsel %vm165_vm4, %v455_v3, 0.0 }
  0x37   :  { %v171_v3 = vrot.slane %v170_v4, 4  ;;  %v191_v11 = vsel %vm47_vm0, %v169_v60, 0.0  ;;  %v178_v17 = vrot.slane %v177_v9, 4 }
  0x38   :  { %v84_v42 = vsub.f32 %v38_v0, %v80_v39  ;;  %v85_v43 = vsub.f32 %v39_v1, %v81_v40  ;;  %v184_v0 = vsel %vm47_vm0, %v168_v55, 0.0  ;;  %v192_v20 = vrot.slane %v191_v11, 4 }
  0x39   :  { %v185_v14 = vrot.slane %v184_v0, 4  ;;  %v172_v23 = vadd.f32 %v171_v3, %v170_v4  ;;  %v179_v30 = vadd.f32 %v178_v17, %v177_v9 }
  0x3a   :  { %v86_v44 = vmul.f32 1.442695, %v84_v42  ;;  %v88_v45 = vmul.f32 1.442695, %v85_v43  ;;  %v193_v35 = vadd.f32 %v192_v20, %v191_v11  ;;  %v412_v11 = vmov 1  }
  0x3b   :  { %v186_v27 = vadd.f32 %v185_v14, %v184_v0  ;;  %v173_v41 = vrot.slane %v172_v23, 2 }
  0x3c   :  { %320 = vpow2.f32 %v86_v44  ;;  %v194_v46 = vrot.slane %v193_v35, 2 }
  0x3d   :  { %322 = vpow2.f32 %v88_v45  ;;  %v187_v43 = vrot.slane %v186_v27, 2  ;;  %v180_v45 = vrot.slane %v179_v30, 2  ;;  %v174_v47 = vadd.f32 %v173_v41, %v172_v23 }
  0x3e   :  { %v195_v50 = vadd.f32 %v194_v46, %v193_v35 }
  0x3f   :  { %v188_v48 = vadd.f32 %v187_v43, %v186_v27  ;;  %v181_v49 = vadd.f32 %v180_v45, %v179_v30  ;;  %v175_v51 = vrot.slane %v174_v47, 1 }
  0x40   :  { %v196_v55 = vrot.slane %v195_v50, 1 }
  0x41   :  { %v189_v52 = vrot.slane %v188_v48, 1  ;;  %v182_v53 = vrot.slane %v181_v49, 1  ;;  %v176_v60 = vadd.f32 %v175_v51, %v174_v47 }
  0x43   :  { %v183_v0 = vadd.f32 %v182_v53, %v181_v49 }
  0x46   :  { %v321_v54 = vpop.eup %320 }
  0x47   :  { %v323_v56 = vpop.eup %322  ;;  %v92_v57 = vcombine.high %v321_v54, %v321_v54  ;;  %v96_v58 = vsel %vm47_vm0, %v321_v54, 0.0 }
  0x48   :  { %v93_v61 = vcombine.high %v323_v56, %v323_v56  ;;  %v97_v62 = vrot.slane %v96_v58, 4  ;;  %v110_v63 = vsel %vm47_vm0, %v323_v56, 0.0  ;;  %v411_v56 = vmov 1983009808  }
  0x49   :  { %v103_v5 = vsel %vm47_vm0, %v92_v57, 0.0  ;;  %v111_v6 = vrot.slane %v110_v63, 4  ;;  %v212_v57 = vunpack.c.l.s4 %v411_v56 }
  0x4a   :  { %v98_v1 = vadd.f32 %v97_v62, %v96_v58  ;;  %v104_v7 = vrot.slane %v103_v5, 4  ;;  %v117_v8 = vsel %vm47_vm0, %v93_v61, 0.0 }
  0x4b   :  { %v112_v2 = vadd.f32 %v111_v6, %v110_v63  ;;  %v118_v10 = vrot.slane %v117_v8, 4  ;;  %v190_v63 = vadd.f32 %v189_v52, %v188_v48  ;;  %v213_v9 = vunpack.c.0.s8 %v212_v57 }
  0x4c   :  { %v99_v12 = vrot.slane %v98_v1, 2  ;;  %v105_v13 = vadd.f32 %v104_v7, %v103_v5 }
  0x4d   :  { %v113_v15 = vrot.slane %v112_v2, 2  ;;  %v119_v16 = vadd.f32 %v118_v10, %v117_v8  ;;  %v197_v8 = vadd.f32 %v196_v55, %v195_v50 }
  0x4e   :  { %v100_v18 = vadd.f32 %v99_v12, %v98_v1  ;;  %v106_v19 = vrot.slane %v105_v13, 2  ;;  %v210_v12 = vcombine.low %v412_v11, %v412_v11 }
  0x4f   :  { %v114_v21 = vadd.f32 %v113_v15, %v112_v2  ;;  %v120_v22 = vrot.slane %v119_v16, 2  ;;  %v216_v15 = vsub.s32 %v213_v9, %v463_v25 }
  0x50   :  { %v101_v24 = vrot.slane %v100_v18, 1  ;;  %v107_v26 = vadd.f32 %v106_v19, %v105_v13 }
  0x51   :  { %v115_v28 = vrot.slane %v114_v21, 1  ;;  %v121_v29 = vadd.f32 %v120_v22, %v119_v16 }
  0x52   :  { %v102_v32 = vadd.f32 %v101_v24, %v100_v18  ;;  %v108_v34 = vrot.slane %v107_v26, 1 }
  0x53   :  { %v116_v39 = vadd.f32 %v115_v28, %v114_v21  ;;  %v122_v40 = vrot.slane %v121_v29, 1 }
  0x54   :  { %v109_v42 = vadd.f32 %v108_v34, %v107_v26  ;;  %324 = vlog2.f32 %v102_v32 }
  0x55   :  { %v123_v44 = vadd.f32 %v122_v40, %v121_v29  ;;  %326 = vlog2.f32 %v116_v39 }
  0x56   :  { %328 = vlog2.f32 %v109_v42 }
  0x57   :  { %330 = vlog2.f32 %v123_v44 }
  0x5e   :  { %v325_v54 = vpop.eup %324 }
  0x5f   :  { %v327_v58 = vpop.eup %326  ;;  %v125_v59 = vmul.f32 0.6931472, %v325_v54 }
  0x60   :  { %v329_v61 = vpop.eup %328  ;;  %v129_v62 = vmul.f32 0.6931472, %v327_v58 }
  0x61   :  { %v331_v4 = vpop.eup %330  ;;  %v127_v5 = vmul.f32 0.6931472, %v329_v61  ;;  %v132_v6 = vadd.f32 %v125_v59, %v465_v31  ;;  %v217_v31 = vrot.slane %v210_v12, %v216_v15 }
  0x62   :  { %v131_v1 = vmul.f32 0.6931472, %v331_v4  ;;  %v134_v7 = vadd.f32 %v129_v62, %v467_v33 }
  0x63   :  { %v133_v2 = vadd.f32 %v127_v5, %v472_v37  ;;  %v220_v10 = vsub.f32 %v132_v6, %v176_v60  ;;  %vm218_vm7 = vcmp.ne.s32.totalorder %v217_v31, 0 }
  0x64   :  { %v135_v3 = vadd.f32 %v131_v1, %v474_v38  ;;  %v222_v13 = vsub.f32 %v134_v7, %v190_v63  ;;  %vm219_vm11 = vmand %vm205_vm6, %vm218_vm7 }
  0x65   :  { %v221_v14 = vsub.f32 %v133_v2, %v183_v0 }
  0x66   :  { %v223_v16 = vsub.f32 %v135_v3, %v197_v8 }
  0x67   :  { %v228_v17 = vcombine.low %v220_v10, %v221_v14 }
  0x68   :  { %v236_v18 = vcombine.low %v222_v13, %v223_v16 }
  0x69   :  { %v235_v19 = vrot.slane %v228_v17, %v216_v15 }
  0x6a   :  { %v243_v20 = vrot.slane %v236_v18, %v216_v15 }
  0x6c   :  { %v248_v33 = vrot.slane %v243_v20, 7 }
  0x6e   :  { %v250_v37 = vsel %vm249_vm5, %v248_v33, %v235_v19 }
  0x6f   :  { %v252_v38 = vsel %vm251_vm8, %v248_v33, %v250_v37 }
  0x70   :  { %v254_v21 = vsel %vm253_vm9, %v248_v33, %v252_v38 }
  0x71   :  { %v256_v22 = vsel %vm255_vm10, %v248_v33, %v254_v21 }
  0x72   :  { %v258_v25 = vsel %vm219_vm11, %v256_v22, 0.0 }
  0x73   :  { %v259_v23 = vsub.f32 0.0, %v258_v25 }
  0x75   :  { %v260_v24 = vmul.f32 1.442695, %v259_v23 }
  0x77   :  { %332 = vpow2.f32 %v260_v24 }
  0x81   :  { %v333_v26 = vpop.eup %332 }
  0x82   :  { %v262_v27 = vsub.f32 1.0, %v333_v26 }
  0x84   :  { %v263_v28 = vmax.f32 %v262_v27, 0.0 }
  0x86   :  { %v264_v29 = vmul.f32 %v263_v28, %v263_v28 }
  0x88   :  { %v265_v30 = vmul.f32 %v264_v29, %v258_v25 }
  0x8a   :  { %v273_v36 = vrot.slane %v265_v30, %v216_v15 }
  0x8c   :  { %v274_v32 = vcombine.high %v273_v36, %v273_v36  ;;  %v278_v34 = vsel %vm277_vm12, %v273_v36, 0.0 }
  0x8e   :  { %v279_v35 = vsel %vm277_vm12, %v274_v32, 0.0 }
  0x8f   :  { %v280_v39 = vadd.f32 %v279_v35, %v278_v34 }
  0x91   :  { %281 = vadd.xlane.f32.xlu0 %v280_v39 }
 0x11e   :  { %v282_v40 = vpop.xlane.xlu0 %281 }
 0x11f   :  { %v283_v41 = vrot.slane %v282_v40, 4 }
 0x121   :  { %v284_v42 = vadd.f32 %v283_v41, %v282_v40 }
 0x123   :  { %v285_v43 = vrot.slane %v284_v42, 2 }
 0x125   :  { %v286_v44 = vadd.f32 %v285_v43, %v284_v42 }
 0x127   :  { %v287_v45 = vrot.slane %v286_v44, 1 }
 0x129   :  { %v288_v46 = vadd.f32 %v287_v45, %v286_v44 }
 0x12b   :  { %308 = vpush %v288_v46 }
 0x15c   :  { %s309_s7 = spop %308 }
 0x15d   :  { %v290_v47 = vstv %s309_s7 }
 0x15e   :  { %291 = vst [vmem:[#allocation7] sm:$0xff] %v290_v47 }
 0x15f   :  { %389 = shalt.err (!%p386_p6)
}
 0x160   :  { %s390_s11 = scalar_lea.hbm %s517_s2, 128 }
 0x161   :  { %p391_p7 = scmp.ne.s32.totalorder %s517_s2, %s390_s11  ;;  %p394_p8 = scmp.lt.u32.totalorder %s390_s11, %s517_s2 }
 0x163   :  { %p396_p9 = pnand %p394_p8, %p391_p7 }
 0x165   :  { %399 = shalt.err (!%p396_p9)
}
 0x166   :  { %301 = dma.vmem_to_hbm [thread:$0]  %s299_s6, 128, %s517_s2, [#allocation4]  }
 0x167   :  { %404 = dma.done.wait [#allocation4], 128  }
 0x168   :  { %405 = vsyncadd [#allocation4], 4294967168 }
 0x169   :  { %305 = vsyncpa [#allocation3], 1 }
 0x16a   :  { %306 = vsyncpa [#allocation6], 1 }
 0x16b   :  { %307 = vsyncpa [#allocation4], 1 }

</bundles_post_ra>
